<compile_context>
chip_gen: v5e
topology: v5e:2x2
jax: 0.10.0
libtpu: 0.0.40
codegen_flags: <defaults>
</compile_context>

<pallas_src>
import jax
import jax.numpy as jnp
from jax.experimental import pallas as pl
from jax.experimental.pallas import tpu as pltpu


def _logreg_kernel(ids_ref, mask_ref, emb_ref, w_ref, b_ref, out_ref):
    # ids_ref:  (S, TB) int32   token ids (seq-major, batch on lanes)
    # mask_ref: (S, TB) int32   padding mask (0 == keep, PyTorch convention)
    # emb_ref:  (E, V)  bf16    transposed embedding table
    # w_ref:    (O, E)  f32     nn.Linear weight (natural layout)
    # b_ref:    (O,)    f32     bias, in SMEM
    # out_ref:  (O, TB) f32     lane-dense output (batch on lanes)
    S, TB = ids_ref.shape
    E, V = emb_ref.shape
    O = out_ref.shape[0]

    ids = ids_ref[...]                                       # (S, TB) int32
    keep = (mask_ref[...] == 0).astype(jnp.float32)          # (S, TB) f32 (VPU)

    # Token histogram per batch column: counts[v, b] = sum_s keep[s,b]*(ids[s,b]==v)
    # Short unrolled compare+FMA loop over S on a (V, TB) vreg tile; no 3-D
    # intermediate is materialized.
    iota_v = jax.lax.broadcasted_iota(jnp.int32, (V, TB), 0)  # (V, TB)
    counts = jnp.zeros((V, TB), jnp.float32)
    for s in range(S):
        ids_s = ids[s:s + 1, :]                               # (1, TB)
        keep_s = keep[s:s + 1, :]                             # (1, TB)
        counts = counts + keep_s * (iota_v == ids_s).astype(jnp.float32)

    denom = jnp.sum(keep, axis=0, keepdims=True)              # (1, TB)

    # Single MXU matmul: (E, V) @ (V, TB) -> (E, TB), bf16 inputs, f32 accumulation.
    # counts <= S, exact in bf16 for realistic S.
    h = jnp.dot(emb_ref[...], counts.astype(jnp.bfloat16),
                preferred_element_type=jnp.float32)           # (E, TB) f32

    # Tiny linear head: (O, E) @ (E, TB) -> (O, TB), kept in f32 (negligible cost).
    z = jnp.dot(w_ref[...], h, preferred_element_type=jnp.float32)

    # Masked-mean division deferred past both matmuls (linear in 1/denom);
    # EUP approximate reciprocal keeps it off the VALU.  Fully-padded rows
    # (denom == 0) produce inf/nan, matching the PyTorch reference.
    inv_denom = pl.reciprocal(denom, approx=True)             # (1, TB)

    # Bias read from SMEM scalars -> (O, 1) column.
    bias_col = jnp.concatenate(
        [jnp.full((1, 1), b_ref[o], dtype=jnp.float32) for o in range(O)], axis=0)

    out_ref[...] = (z * inv_denom + bias_col).astype(out_ref.dtype)


def logistic_regression_forward(x_ids, embedding, weight, bias, padding_mask=None):
    """Pallas forward pass matching LogisticRegression.forward.

    x_ids:        (B, S) int token ids
    embedding:    (V, E) f32
    weight:       (O, E) f32  (nn.Linear weight layout)
    bias:         (O,)   f32
    padding_mask: (B, S) int or None (0 == keep token)
    returns:      (B,) if O == 1 else (B, O)   (mirrors .squeeze(-1))
    """
    B, S = x_ids.shape
    V, E = embedding.shape
    O = weight.shape[0]

    if padding_mask is None:
        # All-keep mask => masked mean reduces to plain mean over dim=1.
        padding_mask = jnp.zeros((B, S), dtype=jnp.int32)

    # Wrapper-side layout plumbing (free): seq-major ids/mask, (E, V) table so
    # the pooled activations come out batch-on-lane, weight in natural (O, E).
    ids_t = x_ids.astype(jnp.int32).T                  # (S, B)
    mask_t = padding_mask.astype(jnp.int32).T          # (S, B)
    emb_t = embedding.astype(jnp.bfloat16).T           # (E, V) bf16 for the MXU
    w = weight.astype(jnp.float32)                     # (O, E)
    b = bias.reshape(O).astype(jnp.float32)            # (O,) -> SMEM

    # Batch tile: full B when small; otherwise 128-lane tiles (pad B).
    if B <= 128:
        TB, B_pad = B, B
    else:
        TB = 128
        B_pad = ((B + TB - 1) // TB) * TB
    if B_pad != B:
        pad = B_pad - B
        ids_t = jnp.pad(ids_t, ((0, 0), (0, pad)))     # pad ids with token 0
        mask_t = jnp.pad(mask_t, ((0, 0), (0, pad)))   # mask 0 (keep) -> finite, sliced off
    grid = (B_pad // TB,)

    # Scoped-VMEM estimate; only raise the limit above the conservative default
    # (16 MiB on v5e / 32 MiB on v6e+) when the resident operands need it.
    block_bytes = 2 * (S * TB * 4) + O * TB * 4                 # ids + mask + out blocks
    resident_bytes = emb_t.size * 2 + w.size * 4                # bf16 table + f32 weight
    est_vmem = 2 * (block_bytes + resident_bytes)               # double-buffer headroom
    cp_kwargs = {"dimension_semantics": ("parallel",)}
    if est_vmem > 16 * 2**20:
        cp_kwargs["vmem_limit_bytes"] = int(min(est_vmem * 1.5, 96 * 2**20))

    out = pl.pallas_call(
        _logreg_kernel,
        grid=grid,
        in_specs=[
            pl.BlockSpec((S, TB), lambda i: (0, i)),            # ids   (seq, batch-tile)
            pl.BlockSpec((S, TB), lambda i: (0, i)),            # mask
            pl.BlockSpec((E, V), lambda i: (0, 0)),             # embedding table (resident)
            pl.BlockSpec((O, E), lambda i: (0, 0)),             # linear weight   (resident)
            pl.BlockSpec(memory_space=pltpu.MemorySpace.SMEM),  # bias scalars
        ],
        out_specs=pl.BlockSpec((O, TB), lambda i: (0, i)),      # lane-dense (O, batch)
        out_shape=jax.ShapeDtypeStruct((O, B_pad), jnp.float32),
        compiler_params=pltpu.CompilerParams(**cp_kwargs),
    )(ids_t, mask_t, emb_t, w, b)

    out = out[:, :B].T                                          # (B, O)
    return out[:, 0] if O == 1 else out


if __name__ == "__main__":
    # Small deterministic setup consistent with the module:
    # input_dim (vocab) = 32, embedding_dim = 32, output_dim = 1, batch = 2, seq = 8
    V, E, O = 32, 32, 1
    B, S = 2, 8

    key = jax.random.PRNGKey(0)
    k_ids, k_mask, k_emb, k_w, k_b = jax.random.split(key, 5)

    x_ids = jax.random.randint(k_ids, (B, S), 0, V, dtype=jnp.int32)
    # Mask: 0 = keep, 1 = pad (same convention as the PyTorch module).
    padding_mask = (jax.random.uniform(k_mask, (B, S)) > 0.75).astype(jnp.int32)
    padding_mask = padding_mask.at[:, 0].set(0)   # at least one kept token per row

    embedding = jax.random.normal(k_emb, (V, E), dtype=jnp.float32)
    weight = 0.1 * jax.random.normal(k_w, (O, E), dtype=jnp.float32)
    bias = 0.01 * jax.random.normal(k_b, (O,), dtype=jnp.float32)

    out_masked = logistic_regression_forward(x_ids, embedding, weight, bias, padding_mask)
    out_plain = logistic_regression_forward(x_ids, embedding, weight, bias, None)
    jax.block_until_ready((out_masked, out_plain))

    # Reference in plain JAX (full f32; kernel uses bf16 MXU operands + approx
    # reciprocal, hence the modest tolerance).
    emb_x = embedding[x_ids]                                    # (B, S, E)
    keep = (padding_mask == 0)[..., None].astype(jnp.float32)
    ref_masked = ((emb_x * keep).sum(1) / keep.sum(1)) @ weight.T + bias
    ref_masked = jnp.squeeze(ref_masked, -1)
    ref_plain = jnp.squeeze(emb_x.mean(1) @ weight.T + bias, -1)

    assert out_masked.shape == (B,) and out_plain.shape == (B,)
    assert jnp.allclose(out_masked, ref_masked, atol=2e-2, rtol=2e-2), (out_masked, ref_masked)
    assert jnp.allclose(out_plain, ref_plain, atol=2e-2, rtol=2e-2), (out_plain, ref_plain)

    print("KERNEL_OK")
</pallas_src>

<mosaic_0001>
module attributes {stable_mosaic.version = 11 : i64} {
  func.func @_logreg_kernel(%arg0: i32, %arg1: memref<8x2xi32, #tpu.memory_space<vmem>>, %arg2: memref<8x2xi32, #tpu.memory_space<vmem>>, %arg3: memref<32x32xbf16, #tpu.memory_space<vmem>>, %arg4: memref<1x32xf32, #tpu.memory_space<vmem>>, %arg5: memref<1xf32, #tpu.memory_space<smem>>, %arg6: memref<1x2xf32, #tpu.memory_space<vmem>>) attributes {dimension_semantics = [#tpu.dimension_semantics<parallel>], iteration_bounds = array<i64: 1>, scalar_prefetch = 0 : i64, scratch_operands = 0 : i64, tpu.core_type = #tpu.core_type<tc>, window_params = [{transform_indices = @transform_0, window_bounds = array<i64: 8, 2>}, {transform_indices = @transform_1, window_bounds = array<i64: 8, 2>}, {pipeline_mode = #tpu.pipeline_mode<synchronous>, transform_indices = @transform_2, window_bounds = array<i64: 32, 32>}, {pipeline_mode = #tpu.pipeline_mode<synchronous>, transform_indices = @transform_3, window_bounds = array<i64: 1, 32>}, {transform_indices = @transform_4, window_bounds = array<i64: 1>}, {transform_indices = @transform_5, window_bounds = array<i64: 1, 2>}]} {
    %c0 = arith.constant 0 : index
    %c0_0 = arith.constant 0 : index
    %0 = vector.load %arg1[%c0, %c0_0] : memref<8x2xi32, #tpu.memory_space<vmem>>, vector<8x2xi32>
    %c0_1 = arith.constant 0 : index
    %c0_2 = arith.constant 0 : index
    %1 = vector.load %arg2[%c0_1, %c0_2] : memref<8x2xi32, #tpu.memory_space<vmem>>, vector<8x2xi32>
    %c0_i32 = arith.constant 0 : i32
    %2 = vector.broadcast %c0_i32 : i32 to vector<8x2xi32>
    %3 = arith.cmpi eq, %1, %2 : vector<8x2xi32>
    %4 = arith.extui %3 : vector<8x2xi1> to vector<8x2xi32>
    %5 = arith.sitofp %4 : vector<8x2xi32> to vector<8x2xf32>
    %6 = tpu.iota {dimensions = array<i32: 0>} : vector<32x2xi32>
    %cst = arith.constant 0.000000e+00 : f32
    %7 = vector.broadcast %cst : f32 to vector<32x2xf32>
    %8 = vector.extract_strided_slice %0 {offsets = [0, 0], sizes = [1, 2], strides = [1, 1]} : vector<8x2xi32> to vector<1x2xi32>
    %9 = vector.extract_strided_slice %5 {offsets = [0, 0], sizes = [1, 2], strides = [1, 1]} : vector<8x2xf32> to vector<1x2xf32>
    %10 = vector.broadcast %8 : vector<1x2xi32> to vector<32x2xi32>
    %11 = arith.cmpi eq, %6, %10 : vector<32x2xi32>
    %12 = arith.extui %11 : vector<32x2xi1> to vector<32x2xi32>
    %13 = arith.sitofp %12 : vector<32x2xi32> to vector<32x2xf32>
    %14 = vector.broadcast %9 : vector<1x2xf32> to vector<32x2xf32>
    %15 = arith.mulf %14, %13 : vector<32x2xf32>
    %16 = arith.addf %7, %15 : vector<32x2xf32>
    %17 = vector.extract_strided_slice %0 {offsets = [1, 0], sizes = [1, 2], strides = [1, 1]} : vector<8x2xi32> to vector<1x2xi32>
    %18 = vector.extract_strided_slice %5 {offsets = [1, 0], sizes = [1, 2], strides = [1, 1]} : vector<8x2xf32> to vector<1x2xf32>
    %19 = vector.broadcast %17 : vector<1x2xi32> to vector<32x2xi32>
    %20 = arith.cmpi eq, %6, %19 : vector<32x2xi32>
    %21 = arith.extui %20 : vector<32x2xi1> to vector<32x2xi32>
    %22 = arith.sitofp %21 : vector<32x2xi32> to vector<32x2xf32>
    %23 = vector.broadcast %18 : vector<1x2xf32> to vector<32x2xf32>
    %24 = arith.mulf %23, %22 : vector<32x2xf32>
    %25 = arith.addf %16, %24 : vector<32x2xf32>
    %26 = vector.extract_strided_slice %0 {offsets = [2, 0], sizes = [1, 2], strides = [1, 1]} : vector<8x2xi32> to vector<1x2xi32>
    %27 = vector.extract_strided_slice %5 {offsets = [2, 0], sizes = [1, 2], strides = [1, 1]} : vector<8x2xf32> to vector<1x2xf32>
    %28 = vector.broadcast %26 : vector<1x2xi32> to vector<32x2xi32>
    %29 = arith.cmpi eq, %6, %28 : vector<32x2xi32>
    %30 = arith.extui %29 : vector<32x2xi1> to vector<32x2xi32>
    %31 = arith.sitofp %30 : vector<32x2xi32> to vector<32x2xf32>
    %32 = vector.broadcast %27 : vector<1x2xf32> to vector<32x2xf32>
    %33 = arith.mulf %32, %31 : vector<32x2xf32>
    %34 = arith.addf %25, %33 : vector<32x2xf32>
    %35 = vector.extract_strided_slice %0 {offsets = [3, 0], sizes = [1, 2], strides = [1, 1]} : vector<8x2xi32> to vector<1x2xi32>
    %36 = vector.extract_strided_slice %5 {offsets = [3, 0], sizes = [1, 2], strides = [1, 1]} : vector<8x2xf32> to vector<1x2xf32>
    %37 = vector.broadcast %35 : vector<1x2xi32> to vector<32x2xi32>
    %38 = arith.cmpi eq, %6, %37 : vector<32x2xi32>
    %39 = arith.extui %38 : vector<32x2xi1> to vector<32x2xi32>
    %40 = arith.sitofp %39 : vector<32x2xi32> to vector<32x2xf32>
    %41 = vector.broadcast %36 : vector<1x2xf32> to vector<32x2xf32>
    %42 = arith.mulf %41, %40 : vector<32x2xf32>
    %43 = arith.addf %34, %42 : vector<32x2xf32>
    %44 = vector.extract_strided_slice %0 {offsets = [4, 0], sizes = [1, 2], strides = [1, 1]} : vector<8x2xi32> to vector<1x2xi32>
    %45 = vector.extract_strided_slice %5 {offsets = [4, 0], sizes = [1, 2], strides = [1, 1]} : vector<8x2xf32> to vector<1x2xf32>
    %46 = vector.broadcast %44 : vector<1x2xi32> to vector<32x2xi32>
    %47 = arith.cmpi eq, %6, %46 : vector<32x2xi32>
    %48 = arith.extui %47 : vector<32x2xi1> to vector<32x2xi32>
    %49 = arith.sitofp %48 : vector<32x2xi32> to vector<32x2xf32>
    %50 = vector.broadcast %45 : vector<1x2xf32> to vector<32x2xf32>
    %51 = arith.mulf %50, %49 : vector<32x2xf32>
    %52 = arith.addf %43, %51 : vector<32x2xf32>
    %53 = vector.extract_strided_slice %0 {offsets = [5, 0], sizes = [1, 2], strides = [1, 1]} : vector<8x2xi32> to vector<1x2xi32>
    %54 = vector.extract_strided_slice %5 {offsets = [5, 0], sizes = [1, 2], strides = [1, 1]} : vector<8x2xf32> to vector<1x2xf32>
    %55 = vector.broadcast %53 : vector<1x2xi32> to vector<32x2xi32>
    %56 = arith.cmpi eq, %6, %55 : vector<32x2xi32>
    %57 = arith.extui %56 : vector<32x2xi1> to vector<32x2xi32>
    %58 = arith.sitofp %57 : vector<32x2xi32> to vector<32x2xf32>
    %59 = vector.broadcast %54 : vector<1x2xf32> to vector<32x2xf32>
    %60 = arith.mulf %59, %58 : vector<32x2xf32>
    %61 = arith.addf %52, %60 : vector<32x2xf32>
    %62 = vector.extract_strided_slice %0 {offsets = [6, 0], sizes = [1, 2], strides = [1, 1]} : vector<8x2xi32> to vector<1x2xi32>
    %63 = vector.extract_strided_slice %5 {offsets = [6, 0], sizes = [1, 2], strides = [1, 1]} : vector<8x2xf32> to vector<1x2xf32>
    %64 = vector.broadcast %62 : vector<1x2xi32> to vector<32x2xi32>
    %65 = arith.cmpi eq, %6, %64 : vector<32x2xi32>
    %66 = arith.extui %65 : vector<32x2xi1> to vector<32x2xi32>
    %67 = arith.sitofp %66 : vector<32x2xi32> to vector<32x2xf32>
    %68 = vector.broadcast %63 : vector<1x2xf32> to vector<32x2xf32>
    %69 = arith.mulf %68, %67 : vector<32x2xf32>
    %70 = arith.addf %61, %69 : vector<32x2xf32>
    %71 = vector.extract_strided_slice %0 {offsets = [7, 0], sizes = [1, 2], strides = [1, 1]} : vector<8x2xi32> to vector<1x2xi32>
    %72 = vector.extract_strided_slice %5 {offsets = [7, 0], sizes = [1, 2], strides = [1, 1]} : vector<8x2xf32> to vector<1x2xf32>
    %73 = vector.broadcast %71 : vector<1x2xi32> to vector<32x2xi32>
    %74 = arith.cmpi eq, %6, %73 : vector<32x2xi32>
    %75 = arith.extui %74 : vector<32x2xi1> to vector<32x2xi32>
    %76 = arith.sitofp %75 : vector<32x2xi32> to vector<32x2xf32>
    %77 = vector.broadcast %72 : vector<1x2xf32> to vector<32x2xf32>
    %78 = arith.mulf %77, %76 : vector<32x2xf32>
    %79 = arith.addf %70, %78 : vector<32x2xf32>
    %cst_3 = arith.constant dense<0.000000e+00> : vector<2xf32>
    %80 = vector.multi_reduction <add>, %5, %cst_3 [0] : vector<8x2xf32> to vector<2xf32>
    %81 = vector.shape_cast %80 : vector<2xf32> to vector<1x2xf32>
    %c0_4 = arith.constant 0 : index
    %c0_5 = arith.constant 0 : index
    %82 = vector.load %arg3[%c0_4, %c0_5] : memref<32x32xbf16, #tpu.memory_space<vmem>>, vector<32x32xbf16>
    %83 = arith.truncf %79 : vector<32x2xf32> to vector<32x2xbf16>
    %cst_6 = arith.constant dense<0.000000e+00> : vector<32x2xf32>
    %84 = tpu.matmul %82, %83, %cst_6 {dimension_numbers = #tpu.dot_dimension_numbers<[1], [0], [0], [1], [0, 0, 1, 1], [], []>} : vector<32x32xbf16>, vector<32x2xbf16>, vector<32x2xf32> -> vector<32x2xf32>
    %c0_7 = arith.constant 0 : index
    %c0_8 = arith.constant 0 : index
    %85 = vector.load %arg4[%c0_7, %c0_8] : memref<1x32xf32, #tpu.memory_space<vmem>>, vector<1x32xf32>
    %cst_9 = arith.constant dense<0.000000e+00> : vector<1x2xf32>
    %86 = tpu.matmul %85, %84, %cst_9 {dimension_numbers = #tpu.dot_dimension_numbers<[1], [0], [0], [1], [0, 0, 1, 1], [], []>} : vector<1x32xf32>, vector<32x2xf32>, vector<1x2xf32> -> vector<1x2xf32>
    %87 = tpu.reciprocal %81 {approx = true} : vector<1x2xf32> -> vector<1x2xf32>
    %c0_10 = arith.constant 0 : index
    %88 = memref.load %arg5[%c0_10] : memref<1xf32, #tpu.memory_space<smem>>
    %89 = vector.broadcast %88 : f32 to vector<1x1xf32>
    %90 = arith.mulf %86, %87 : vector<1x2xf32>
    %91 = vector.broadcast %89 : vector<1x1xf32> to vector<1x2xf32>
    %92 = arith.addf %90, %91 : vector<1x2xf32>
    %c0_11 = arith.constant 0 : index
    %c0_12 = arith.constant 0 : index
    %93 = vector.load %arg6[%c0_11, %c0_12] : memref<1x2xf32, #tpu.memory_space<vmem>>, vector<1x2xf32>
    tpu.vector_store %arg6[%c0_11, %c0_12], %92 {strides = array<i32>} : memref<1x2xf32, #tpu.memory_space<vmem>>, vector<1x2xf32>,
    return
  }
  func.func @transform_0(%arg0: i32) -> (i32, i32) {
    %c0_i32 = arith.constant 0 : i32
    %c0_i32_0 = arith.constant 0 : i32
    return %c0_i32, %arg0 : i32, i32
  }
  func.func @transform_1(%arg0: i32) -> (i32, i32) {
    %c0_i32 = arith.constant 0 : i32
    %c0_i32_0 = arith.constant 0 : i32
    return %c0_i32, %arg0 : i32, i32
  }
  func.func @transform_2(%arg0: i32) -> (i32, i32) {
    %c0_i32 = arith.constant 0 : i32
    %c0_i32_0 = arith.constant 0 : i32
    %c0_i32_1 = arith.constant 0 : i32
    return %c0_i32, %c0_i32_0 : i32, i32
  }
  func.func @transform_3(%arg0: i32) -> (i32, i32) {
    %c0_i32 = arith.constant 0 : i32
    %c0_i32_0 = arith.constant 0 : i32
    %c0_i32_1 = arith.constant 0 : i32
    return %c0_i32, %c0_i32_0 : i32, i32
  }
  func.func @transform_4(%arg0: i32) -> i32 {
    %c0_i32 = arith.constant 0 : i32
    %c0_i32_0 = arith.constant 0 : i32
    return %c0_i32 : i32
  }
  func.func @transform_5(%arg0: i32) -> (i32, i32) {
    %c0_i32 = arith.constant 0 : i32
    %c0_i32_0 = arith.constant 0 : i32
    return %c0_i32, %arg0 : i32, i32
  }
}

</mosaic_0001>

<bundles_post_ra>
// kernel: tpu_custom_call.1
= control target key start
LH: loop header
LB: loop body
LE: loop exit
PB: predicated region body
PF: predicated region fallthrough
CT: control target
= control target key end

     0   :  { %v28_v2 = vlaneseq  ;;  %s620_s0 = inlined_call_operand.vmem [shape: s32[8,2], index: 0, kind: input, shape index: {}]   ;;  %s621_s1 = inlined_call_operand.vmem [shape: s32[8,2], index: 1, kind: input, shape index: {}]   ;;  %s622_s2 = inlined_call_operand.vmem [shape: bf16[32,32], index: 2, kind: input, shape index: {}]   ;;  %s623_s3 = inlined_call_operand.vmem [shape: f32[1,32], index: 3, kind: input, shape index: {}]   ;;  %s624_s4 = inlined_call_operand.<no memory space> [shape: f32[1], index: 4, kind: input, shape index: {}]   ;;  %s625_s5 = inlined_call_operand.hbm [shape: f32[1,2], index: 5, kind: output, shape index: {}]  }
   0x1   :  { %v23_v0 = vld [vmem:[%s620_s0] sm:$0xff] }
   0x2   :  { %v24_v1 = vld [vmem:[%s621_s1] sm:$0xff] }
   0x3   :  { %11 = vsyncpa [#allocation4], 0  ;;  %vm25_vm0 = vcmp.eq.s32.totalorder %v24_v1, 0  ;;  %v422_v3 = vperm.slane %v23_v0, 0  ;;  %v424_v4 = vperm.slane %v23_v0, 1  ;;  %v426_v5 = vperm.slane %v23_v0, 2 }
   0x4   :  { %v384_v6 = vmov 0.0   ;;  %v431_v8 = vshrl.u32 %v28_v2, 7  ;;  %v433_v9 = vperm.slane %v23_v0, 3  ;;  %v435_v10 = vperm.slane %v23_v0, 4  ;;  %s385_s27 = smov [#allocation3]   ;;  %s297_s30 = sshll.u32 %s625_s5, 4  ;;  %s298_s30 = int_to_ptr.hbm [resolvable:$true] %s297_s30 }
   0x5   :  { %v429_v7 = vsel %vm25_vm0, 1.0, %v384_v6  ;;  %v458_v18 = vperm.slane %v23_v0, 5  ;;  %v463_v20 = vperm.slane %v23_v0, 6  ;;  %v468_v22 = vperm.slane %v23_v0, 7 }
   0x6   :  { %v438_v11 = vperm.slane %v429_v7, 0  ;;  %v441_v12 = vperm.slane %v429_v7, 1  ;;  %v444_v13 = vperm.slane %v429_v7, 2  ;;  %v447_v14 = vperm.slane %v429_v7, 3 }
   0x7   :  { %v450_v15 = vadd.s32 16, %v431_v8  ;;  %v453_v16 = vadd.s32 24, %v431_v8  ;;  %v456_v17 = vperm.slane %v429_v7, 4  ;;  %v461_v19 = vperm.slane %v429_v7, 5 }
   0x8   :  { %v466_v21 = vperm.slane %v429_v7, 6  ;;  %v533_v63 = vperm.slane %v429_v7, 7  ;;  %v536_v0 = vadd.s32 8, %v431_v8 }
   0x9   :  { %vm36_vm1 = vcmp.eq.s32.totalorder %v450_v15, %v422_v3  ;;  %vm37_vm2 = vcmp.eq.s32.totalorder %v453_v16, %v422_v3  ;;  %vm58_vm3 = vcmp.eq.s32.totalorder %v450_v15, %v424_v4  ;;  %vm59_vm4 = vcmp.eq.s32.totalorder %v453_v16, %v424_v4 }
   0xa   :  { %v309_v23 = vsel %vm36_vm1, 1.0, %v384_v6  ;;  %v310_v24 = vsel %vm37_vm2, 1.0, %v384_v6  ;;  %v313_v25 = vsel %vm58_vm3, 1.0, %v384_v6  ;;  %v314_v26 = vsel %vm59_vm4, 1.0, %v384_v6 }
   0xb   :  { %v49_v27 = vmul.f32 %v309_v23, %v438_v11  ;;  %v50_v28 = vmul.f32 %v310_v24, %v438_v11  ;;  %v71_v29 = vmul.f32 %v313_v25, %v441_v12  ;;  %v72_v30 = vmul.f32 %v314_v26, %v441_v12 }
   0xc   :  { %vm80_vm5 = vcmp.eq.s32.totalorder %v450_v15, %v426_v5  ;;  %vm81_vm6 = vcmp.eq.s32.totalorder %v453_v16, %v426_v5  ;;  %vm102_vm7 = vcmp.eq.s32.totalorder %v450_v15, %v433_v9  ;;  %vm103_vm8 = vcmp.eq.s32.totalorder %v453_v16, %v433_v9 }
   0xd   :  { %v75_v31 = vadd.f32 %v71_v29, %v49_v27  ;;  %v76_v32 = vadd.f32 %v72_v30, %v50_v28  ;;  %v317_v33 = vsel %vm80_vm5, 1.0, %v384_v6  ;;  %v318_v34 = vsel %vm81_vm6, 1.0, %v384_v6 }
   0xe   :  { %v93_v35 = vmul.f32 %v317_v33, %v444_v13  ;;  %v94_v36 = vmul.f32 %v318_v34, %v444_v13  ;;  %v321_v37 = vsel %vm102_vm7, 1.0, %v384_v6  ;;  %v322_v38 = vsel %vm103_vm8, 1.0, %v384_v6 }
   0xf   :  { %v115_v39 = vmul.f32 %v321_v37, %v447_v14  ;;  %v116_v40 = vmul.f32 %v322_v38, %v447_v14  ;;  %vm124_vm9 = vcmp.eq.s32.totalorder %v450_v15, %v435_v10  ;;  %vm125_vm10 = vcmp.eq.s32.totalorder %v453_v16, %v435_v10 }
  0x10   :  { %v97_v41 = vadd.f32 %v93_v35, %v75_v31  ;;  %v98_v42 = vadd.f32 %v94_v36, %v76_v32  ;;  %v325_v43 = vsel %vm124_vm9, 1.0, %v384_v6  ;;  %v326_v44 = vsel %vm125_vm10, 1.0, %v384_v6 }
  0x11   :  { %v137_v45 = vmul.f32 %v325_v43, %v456_v17  ;;  %v138_v46 = vmul.f32 %v326_v44, %v456_v17  ;;  %vm146_vm11 = vcmp.eq.s32.totalorder %v450_v15, %v458_v18  ;;  %vm147_vm12 = vcmp.eq.s32.totalorder %v453_v16, %v458_v18 }
  0x12   :  { %v119_v47 = vadd.f32 %v115_v39, %v97_v41  ;;  %v120_v48 = vadd.f32 %v116_v40, %v98_v42  ;;  %v329_v49 = vsel %vm146_vm11, 1.0, %v384_v6  ;;  %v330_v50 = vsel %vm147_vm12, 1.0, %v384_v6 }
  0x13   :  { %v159_v51 = vmul.f32 %v329_v49, %v461_v19  ;;  %v160_v52 = vmul.f32 %v330_v50, %v461_v19  ;;  %vm168_vm13 = vcmp.eq.s32.totalorder %v450_v15, %v463_v20  ;;  %vm169_vm14 = vcmp.eq.s32.totalorder %v453_v16, %v463_v20 }
  0x14   :  { %v141_v53 = vadd.f32 %v137_v45, %v119_v47  ;;  %v142_v54 = vadd.f32 %v138_v46, %v120_v48  ;;  %v333_v55 = vsel %vm168_vm13, 1.0, %v384_v6  ;;  %v334_v56 = vsel %vm169_vm14, 1.0, %v384_v6 }
  0x15   :  { %v181_v57 = vmul.f32 %v333_v55, %v466_v21  ;;  %v182_v58 = vmul.f32 %v334_v56, %v466_v21  ;;  %vm190_vm15 = vcmp.eq.s32.totalorder %v450_v15, %v468_v22  ;;  %vm191_vm0 = vcmp.eq.s32.totalorder %v453_v16, %v468_v22 }
  0x16   :  { %v163_v59 = vadd.f32 %v159_v51, %v141_v53  ;;  %v164_v60 = vadd.f32 %v160_v52, %v142_v54  ;;  %v337_v61 = vsel %vm190_vm15, 1.0, %v384_v6  ;;  %v338_v62 = vsel %vm191_vm0, 1.0, %v384_v6 }
  0x17   :  { %vm34_vm1 = vcmp.eq.s32.totalorder %v431_v8, %v422_v3  ;;  %vm56_vm2 = vcmp.eq.s32.totalorder %v431_v8, %v424_v4  ;;  %v203_v23 = vmul.f32 %v337_v61, %v533_v63  ;;  %v204_v24 = vmul.f32 %v338_v62, %v533_v63  ;;  %v259_v62 = vld [vmem:[%s623_s3] sm:$0x1]  ;;  %s295_s3 = sshll.u32 %s385_s27, 4  ;;  %s296_s3 = int_to_ptr.vmem [resolvable:$true] %s295_s3 }
  0x18   :  { %v185_v1 = vadd.f32 %v181_v57, %v163_v59  ;;  %v186_v2 = vadd.f32 %v182_v58, %v164_v60  ;;  %v307_v15 = vsel %vm34_vm1, 1.0, %v384_v6  ;;  %v311_v16 = vsel %vm56_vm2, 1.0, %v384_v6 }
  0x19   :  { %vm35_vm3 = vcmp.eq.s32.totalorder %v536_v0, %v422_v3  ;;  %v47_v25 = vmul.f32 %v307_v15, %v438_v11  ;;  %vm57_vm4 = vcmp.eq.s32.totalorder %v536_v0, %v424_v4  ;;  %v69_v27 = vmul.f32 %v311_v16, %v441_v12 }
  0x1a   :  { %v308_v26 = vsel %vm35_vm3, 1.0, %v384_v6  ;;  %vm78_vm5 = vcmp.eq.s32.totalorder %v431_v8, %v426_v5  ;;  %v207_v28 = vadd.f32 %v203_v23, %v185_v1  ;;  %v208_v29 = vadd.f32 %v204_v24, %v186_v2 }
  0x1b   :  { %v48_v30 = vmul.f32 %v308_v26, %v438_v11  ;;  %v312_v31 = vsel %vm57_vm4, 1.0, %v384_v6  ;;  %v73_v32 = vadd.f32 %v69_v27, %v47_v25  ;;  %vm79_vm6 = vcmp.eq.s32.totalorder %v536_v0, %v426_v5 }
  0x1c   :  { %v70_v3 = vmul.f32 %v312_v31, %v441_v12  ;;  %v315_v33 = vsel %vm78_vm5, 1.0, %v384_v6  ;;  %v222_v4 = vpack.c.bf16 %v208_v29, %v207_v28  ;;  %v316_v34 = vsel %vm79_vm6, 1.0, %v384_v6 }
  0x1d   :  { %v91_v35 = vmul.f32 %v315_v33, %v444_v13  ;;  %vm100_vm7 = vcmp.eq.s32.totalorder %v431_v8, %v433_v9  ;;  %v92_v11 = vmul.f32 %v316_v34, %v444_v13  ;;  %vm101_vm8 = vcmp.eq.s32.totalorder %v536_v0, %v433_v9 }
  0x1e   :  { %v74_v36 = vadd.f32 %v70_v3, %v48_v30  ;;  %v319_v12 = vsel %vm100_vm7, 1.0, %v384_v6  ;;  %352 = vmatpush.bf16.msra.mxu2 %v222_v4  ;;  %246 = vmatpush.bf16.msra.mxu0 %v222_v4  ;;  %v320_v37 = vsel %vm101_vm8, 1.0, %v384_v6  ;;  %vm122_vm9 = vcmp.eq.s32.totalorder %v431_v8, %v435_v10 }
  0x1f   :  { %v95_v5 = vadd.f32 %v91_v35, %v73_v32  ;;  %v113_v38 = vmul.f32 %v319_v12, %v447_v14  ;;  %v114_v40 = vmul.f32 %v320_v37, %v447_v14  ;;  %vm123_vm10 = vcmp.eq.s32.totalorder %v536_v0, %v435_v10 }
  0x20   :  { %v96_v39 = vadd.f32 %v92_v11, %v74_v36  ;;  %v323_v9 = vsel %vm122_vm9, 1.0, %v384_v6  ;;  %v324_v41 = vsel %vm123_vm10, 1.0, %v384_v6  ;;  %vm144_vm11 = vcmp.eq.s32.totalorder %v431_v8, %v458_v18 }
  0x21   :  { %v117_v13 = vadd.f32 %v113_v38, %v95_v5  ;;  %v135_v42 = vmul.f32 %v323_v9, %v456_v17  ;;  %v136_v44 = vmul.f32 %v324_v41, %v456_v17  ;;  %vm145_vm12 = vcmp.eq.s32.totalorder %v536_v0, %v458_v18 }
  0x22   :  { %v118_v43 = vadd.f32 %v114_v40, %v96_v39  ;;  %v327_v14 = vsel %vm144_vm11, 1.0, %v384_v6  ;;  %v328_v10 = vsel %vm145_vm12, 1.0, %v384_v6  ;;  %vm166_vm13 = vcmp.eq.s32.totalorder %v431_v8, %v463_v20 }
  0x23   :  { %v139_v45 = vadd.f32 %v135_v42, %v117_v13  ;;  %v157_v46 = vmul.f32 %v327_v14, %v461_v19  ;;  %v158_v48 = vmul.f32 %v328_v10, %v461_v19  ;;  %vm167_vm14 = vcmp.eq.s32.totalorder %v536_v0, %v463_v20 }
  0x24   :  { %v140_v47 = vadd.f32 %v136_v44, %v118_v43  ;;  %v331_v17 = vsel %vm166_vm13, 1.0, %v384_v6  ;;  %v332_v18 = vsel %vm167_vm14, 1.0, %v384_v6  ;;  %vm188_vm15 = vcmp.eq.s32.totalorder %v431_v8, %v468_v22  ;;  %v351_v8 = vld [vmem:[%s622_s2 + $0x8] sm:$0xff] }
  0x25   :  { %v161_v49 = vadd.f32 %v157_v46, %v139_v45  ;;  %v179_v50 = vmul.f32 %v331_v17, %v466_v21  ;;  %v180_v52 = vmul.f32 %v332_v18, %v466_v21  ;;  %vm189_vm0 = vcmp.eq.s32.totalorder %v536_v0, %v468_v22  ;;  %v350_v21 = vld [vmem:[%s622_s2] sm:$0xff] }
  0x26   :  { %v162_v51 = vadd.f32 %v158_v48, %v140_v47  ;;  %v335_v19 = vsel %vm188_vm15, 1.0, %v384_v6  ;;  %v336_v20 = vsel %vm189_vm0, 1.0, %v384_v6  ;;  %vm233_vm1 = vcmask 261120  }
  0x27   :  { %v183_v53 = vadd.f32 %v179_v50, %v161_v49  ;;  %v201_v54 = vmul.f32 %v335_v19, %v533_v63  ;;  %v202_v56 = vmul.f32 %v336_v20, %v533_v63  ;;  %vm209_vm2 = vcmask 15360  }
  0x28   :  { %v184_v55 = vadd.f32 %v180_v52, %v162_v51  ;;  %v210_v63 = vsel %vm209_vm2, %v429_v7, 0.0  ;;  %v286_v26 = vstv %s624_s4  ;;  %vm288_vm3 = vcmask 8192  }
  0x29   :  { %v205_v57 = vadd.f32 %v201_v54, %v183_v53  ;;  %v211_v0 = vrot.slane %v210_v63, 4 }
  0x2a   :  { %v206_v58 = vadd.f32 %v202_v56, %v184_v55 }
  0x2b   :  { %v212_v1 = vadd.f32 %v211_v0, %v210_v63 }
  0x2c   :  { %v221_v59 = vpack.c.bf16 %v206_v58, %v205_v57 }
  0x2d   :  { %v213_v2 = vrot.slane %v212_v1, 2 }
  0x2e   :  { %353 = vmatpush.bf16.msra.mxu2 %v221_v59  ;;  %247 = vmatpush.bf16.msra.mxu0 %v221_v59 }
  0x2f   :  { %v214_v15 = vadd.f32 %v213_v2, %v212_v1 }
  0x31   :  { %348 = vmatmul.msk.bf16.vlgmr.msra.gmra.mxu2 %vm233_vm1, %v351_v8  ;;  %347 = vmatmul.msk.bf16.vlgmr.msra.gmra.mxu0 %vm233_vm1, %v350_v21  ;;  %v215_v16 = vrot.slane %v214_v15, 1 }
  0x33   :  { %v216_v23 = vadd.f32 %v215_v16, %v214_v15 }
  0x35   :  { %356 = vrcp.f32 %v216_v23 }
  0x3b   :  { %v357_v24 = vpop.eup %356 }
  0xae   :  { %v249_v22 = vpop.f32.mrf.mxu0 }
  0xb4   :  { %v254_v6 = vpop.f32.mrf.mxu2 }
  0xb6   :  { %v251_v61 = vpop.f32.mrf.mxu0 }
  0xbc   :  { %v256_v60 = vpop.f32.mrf.mxu2 }
  0xbd   :  { %275 = vmatpush.msra.mxu1 %v256_v60 }
  0xbf   :  { %276 = vmatpush.msra.mxu1 %v254_v6 }
  0xc1   :  { %277 = vmatpush.msra.mxu1 %v251_v61 }
  0xc3   :  { %278 = vmatpush.msra.mxu1 %v249_v22 }
  0xc4   :  { %349 = vmatmul.msk.f32.vlgmr.msra.gmra.mxu1 %vm233_vm1, %v259_v62 }
 0x141   :  { %v280_v25 = vpop.f32.mrf.mxu1 }
 0x142   :  { %v285_v7 = vmul.f32 %v357_v24, %v280_v25 }
 0x144   :  { %v287_v27 = vadd.f32 %v286_v26, %v285_v7 }
 0x146   :  { %289 = vst.msk [vmem:[#allocation3] sm:$0x1] %vm288_vm3, %v287_v27 }
 0x147   :  { %300 = dma.vmem_to_hbm [thread:$0]  %s296_s3, 16, %s298_s30, [#allocation4]  }
 0x148   :  { %382 = dma.done.wait [#allocation4], 16  }
 0x149   :  { %383 = vsyncadd [#allocation4], 4294967280 }
 0x14a   :  { %305 = vsyncpa [#allocation4], 1 }

</bundles_post_ra>
